<compile_context>
chip_gen: v6e
topology: v6e:2x2x1
jax: 0.10.0
libtpu: 0.0.40
codegen_flags: <defaults>
</compile_context>

<pallas_src>
import functools

import jax
import jax.numpy as jnp
from jax.experimental import pallas as pl
from jax.experimental.pallas import tpu as pltpu


def _round_up(x, m):
    return ((x + m - 1) // m) * m


def _cdiv(a, b):
    return (a + b - 1) // b


def _azero_fused_kernel(x_ref, w1_ref, b1_ref, wh_ref, bh_ref, mask_ref, out_ref,
                        *, value_col):
    # x: (TB, D) f32 -> cast to bf16 in-kernel (avoids a host-side cast pass over HBM).
    x = x_ref[...].astype(jnp.bfloat16)
    h = jnp.dot(x, w1_ref[...], preferred_element_type=jnp.float32)
    h = jnp.maximum(h + b1_ref[...], 0.0)                       # ReLU hidden (f32)

    # Fused head: columns [0, A) are policy logits, column A is the value logit,
    # remaining columns are zero padding (lane-dense 128-wide slab, one MXU pass).
    z = jnp.dot(h.astype(wh_ref.dtype), wh_ref[...],
                preferred_element_type=jnp.float32) + bh_ref[...]

    # bf16 {0,1} mask, zero beyond the policy columns and at illegal actions.
    valid = mask_ref[...] > 0
    neg = jnp.float32(-1e30)                                    # finite sentinel: no inf/NaN paths
    ml = jnp.where(valid, z, neg)
    m = jnp.max(ml, axis=1, keepdims=True)                      # >= -1e30 always
    e = jnp.where(valid, jnp.exp(ml - m), 0.0)                  # exactly 0 where illegal / padded
    denom = jnp.sum(e, axis=1, keepdims=True)
    # Exact divide: policy rows sum to 1 to f32 rounding (MCTS priors).  The kernel is
    # HBM-bound, so the divide is hidden; do NOT use pl.reciprocal(approx=True) here.
    p = e / jnp.maximum(denom, jnp.float32(1e-30))              # all-illegal rows -> all-zero row

    # Value head lives in column `value_col` of the same slab; tanh over the single
    # 128-lane-wide slab (one vreg wide, EUP slot otherwise idle).
    v = jnp.tanh(z)
    col = jax.lax.broadcasted_iota(jnp.int32, z.shape, 1)
    out_ref[...] = jnp.where(col == value_col, v, p)            # single unmasked lane-dense store


def pack_inference_params(params):
    """One-time weight packing/casting: call once, reuse across predict_batch calls."""
    w1, b1, wp, bp, wv, bv = params
    H, A = wp.shape
    w_out = _round_up(A + 1, 128)                               # [policy | value | zero pad]
    w_head = jnp.zeros((H, w_out), jnp.float32).at[:, :A].set(wp).at[:, A].set(wv[:, 0])
    b_head = jnp.zeros((1, w_out), jnp.float32).at[:, :A].set(bp).at[:, A].set(bv[:, 0])
    return (w1.astype(jnp.bfloat16), b1.astype(jnp.float32),
            w_head.astype(jnp.bfloat16), b_head.astype(jnp.float32))


def azero_forward_predict(x_nchw, packed_params, mask, *, batch_tile=512):
    """x_nchw: (B, C, H, W) float32, mask: (B, A) float32 of {0,1}.

    Returns (policy, value): (B, A) masked+renormalized policy, (B, 1) tanh value.
    """
    w1b, b1, w_headb, b_head = packed_params
    B = x_nchw.shape[0]
    D, H = w1b.shape
    w_out = w_headb.shape[1]
    A = mask.shape[1]

    x_flat = x_nchw.reshape(B, -1)                    # NCHW flattened row-major (= .view(B,-1))
    assert x_flat.shape[1] == D

    # Batch tiling: multiple of 16 rows (bf16 sublane packing); big tiles amortize the
    # ~0.35us per-step overhead; cap so the parallel axis has >=2 steps for v7x's 2 TCs.
    rows = _round_up(B, 16)
    tb = min(batch_tile, rows)
    if rows // tb < 2 and rows >= 32:
        tb = _round_up(_cdiv(rows, 2), 16)
    b_pad = _round_up(B, tb)

    # Pad rows only when needed (no extra HBM pass when B is already tile-aligned).
    x_in = x_flat if b_pad == B else jnp.pad(x_flat, ((0, b_pad - B), (0, 0)))

    # Lane-dense mask slab in bfloat16 (halves the mask stream vs f32; 0/1 exact).
    # TODO(synk): pass the narrow (B, A) mask and widen in-kernel once Mosaic minor-dim
    # concatenation is unconditionally available; would cut the mask stream another ~4x.
    mask_in = jnp.zeros((b_pad, w_out), jnp.bfloat16).at[:B, :A].set(mask.astype(jnp.bfloat16))

    grid = (b_pad // tb,)
    out = pl.pallas_call(
        functools.partial(_azero_fused_kernel, value_col=A),
        out_shape=jax.ShapeDtypeStruct((b_pad, w_out), jnp.float32),
        grid=grid,
        in_specs=[
            pl.BlockSpec((tb, D), lambda i: (i, 0)),            # activations: per-tile
            pl.BlockSpec((D, H), lambda i: (0, 0)),             # weights: VMEM-resident
            pl.BlockSpec((1, H), lambda i: (0, 0)),
            pl.BlockSpec((H, w_out), lambda i: (0, 0)),
            pl.BlockSpec((1, w_out), lambda i: (0, 0)),
            pl.BlockSpec((tb, w_out), lambda i: (i, 0)),        # mask: per-tile
        ],
        out_specs=pl.BlockSpec((tb, w_out), lambda i: (i, 0)),
        compiler_params=pltpu.CompilerParams(
            dimension_semantics=("parallel",),                  # shard batch tiles on v7x's 2 TCs
            vmem_limit_bytes=32 * 1024 * 1024,                  # safe on v7x's 64 MiB VMEM too
        ),
    )(x_in, w1b, b1, w_headb, b_head, mask_in)
    return out[:B, :A], out[:B, A:A + 1]


def make_params(key, in_dim, hidden, n_actions):
    ks = jax.random.split(key, 6)
    scale1 = 1.0 / jnp.sqrt(in_dim)
    scale2 = 1.0 / jnp.sqrt(hidden)
    w1 = jax.random.normal(ks[0], (in_dim, hidden), jnp.float32) * scale1
    b1 = jax.random.normal(ks[1], (1, hidden), jnp.float32) * 0.01
    wp = jax.random.normal(ks[2], (hidden, n_actions), jnp.float32) * scale2
    bp = jax.random.normal(ks[3], (1, n_actions), jnp.float32) * 0.01
    wv = jax.random.normal(ks[4], (hidden, 1), jnp.float32) * scale2
    bv = jax.random.normal(ks[5], (1, 1), jnp.float32) * 0.01
    return (w1, b1, wp, bp, wv, bv)


def _reference(x_nchw, params, mask):
    """Pure-JAX reference mirroring the kernel's bf16-weight / f32-accumulate numerics."""
    w1, b1, wp, bp, wv, bv = params
    B = x_nchw.shape[0]
    xb = x_nchw.reshape(B, -1).astype(jnp.bfloat16)
    h = jnp.maximum(jnp.dot(xb, w1.astype(jnp.bfloat16),
                            preferred_element_type=jnp.float32) + b1, 0.0)
    hb = h.astype(jnp.bfloat16)
    logits = jnp.dot(hb, wp.astype(jnp.bfloat16),
                     preferred_element_type=jnp.float32) + bp
    p = jax.nn.softmax(logits, axis=1)
    v = jnp.tanh(jnp.dot(hb, wv.astype(jnp.bfloat16),
                         preferred_element_type=jnp.float32) + bv)
    masked = p * mask
    ps = masked / jnp.sum(masked, axis=1, keepdims=True)
    return ps, v


if __name__ == "__main__":
    key = jax.random.PRNGKey(0)
    k_x, k_p = jax.random.split(key, 2)

    # Small game: board_shape = (C=4, H=4, W=4), action_space of size 16.
    B, C, Hs, Ws = 2, 4, 4, 4
    n_actions = 16
    hidden = 32
    in_dim = C * Hs * Ws

    x = jax.random.normal(k_x, (B, C, Hs, Ws), jnp.float32)     # NCHW like torch
    params = make_params(k_p, in_dim, hidden, n_actions)
    packed = pack_inference_params(params)                      # one-time packing

    # Deterministic legal-action mask (every other action legal, row-shifted),
    # guaranteed non-empty per row.
    cols = jnp.arange(n_actions)[None, :]
    rows = jnp.arange(B)[:, None]
    mask = ((cols + rows) % 2 == 0).astype(jnp.float32)

    ps, vs = azero_forward_predict(x, packed, mask)
    jax.block_until_ready((ps, vs))

    # Sanity: shapes, masked policy rows sum to 1, illegal actions exactly zero,
    # values bounded by tanh, and agreement with a pure-JAX reference.
    ref_ps, ref_vs = _reference(x, params, mask)
    assert ps.shape == (B, n_actions) and vs.shape == (B, 1)
    assert bool(jnp.all(jnp.abs(jnp.sum(ps, axis=1) - 1.0) < 1e-3))
    assert bool(jnp.all(jnp.abs(vs) <= 1.0))
    assert bool(jnp.all(ps * (1.0 - mask) == 0.0))
    assert bool(jnp.allclose(ps, ref_ps, atol=2e-3))
    assert bool(jnp.allclose(vs, ref_vs, atol=2e-3))

    print("KERNEL_OK")
</pallas_src>

<mosaic_0001>
module attributes {stable_mosaic.version = 11 : i64} {
  func.func @_azero_fused_kernel(%arg0: i32, %arg1: memref<16x64xf32, #tpu.memory_space<vmem>>, %arg2: memref<64x32xbf16, #tpu.memory_space<vmem>>, %arg3: memref<1x32xf32, #tpu.memory_space<vmem>>, %arg4: memref<32x128xbf16, #tpu.memory_space<vmem>>, %arg5: memref<1x128xf32, #tpu.memory_space<vmem>>, %arg6: memref<16x128xbf16, #tpu.memory_space<vmem>>, %arg7: memref<16x128xf32, #tpu.memory_space<vmem>>) attributes {dimension_semantics = [#tpu.dimension_semantics<parallel>], iteration_bounds = array<i64: 1>, scalar_prefetch = 0 : i64, scratch_operands = 0 : i64, tpu.core_type = #tpu.core_type<tc>, window_params = [{transform_indices = @transform_0, window_bounds = array<i64: 16, 64>}, {pipeline_mode = #tpu.pipeline_mode<synchronous>, transform_indices = @transform_1, window_bounds = array<i64: 64, 32>}, {pipeline_mode = #tpu.pipeline_mode<synchronous>, transform_indices = @transform_2, window_bounds = array<i64: 1, 32>}, {pipeline_mode = #tpu.pipeline_mode<synchronous>, transform_indices = @transform_3, window_bounds = array<i64: 32, 128>}, {pipeline_mode = #tpu.pipeline_mode<synchronous>, transform_indices = @transform_4, window_bounds = array<i64: 1, 128>}, {transform_indices = @transform_5, window_bounds = array<i64: 16, 128>}, {transform_indices = @transform_6, window_bounds = array<i64: 16, 128>}]} {
    %c0 = arith.constant 0 : index
    %c0_0 = arith.constant 0 : index
    %0 = vector.load %arg1[%c0, %c0_0] : memref<16x64xf32, #tpu.memory_space<vmem>>, vector<16x64xf32>
    %1 = arith.truncf %0 : vector<16x64xf32> to vector<16x64xbf16>
    %c0_1 = arith.constant 0 : index
    %c0_2 = arith.constant 0 : index
    %2 = vector.load %arg2[%c0_1, %c0_2] : memref<64x32xbf16, #tpu.memory_space<vmem>>, vector<64x32xbf16>
    %cst = arith.constant dense<0.000000e+00> : vector<16x32xf32>
    %3 = tpu.matmul %1, %2, %cst {dimension_numbers = #tpu.dot_dimension_numbers<[1], [0], [0], [1], [0, 0, 1, 1], [], []>} : vector<16x64xbf16>, vector<64x32xbf16>, vector<16x32xf32> -> vector<16x32xf32>
    %c0_3 = arith.constant 0 : index
    %c0_4 = arith.constant 0 : index
    %4 = vector.load %arg3[%c0_3, %c0_4] : memref<1x32xf32, #tpu.memory_space<vmem>>, vector<1x32xf32>
    %5 = vector.broadcast %4 : vector<1x32xf32> to vector<16x32xf32>
    %6 = arith.addf %3, %5 : vector<16x32xf32>
    %cst_5 = arith.constant 0.000000e+00 : f32
    %7 = vector.broadcast %cst_5 : f32 to vector<16x32xf32>
    %8 = arith.maximumf %6, %7 : vector<16x32xf32>
    %9 = arith.truncf %8 : vector<16x32xf32> to vector<16x32xbf16>
    %c0_6 = arith.constant 0 : index
    %c0_7 = arith.constant 0 : index
    %10 = vector.load %arg4[%c0_6, %c0_7] : memref<32x128xbf16, #tpu.memory_space<vmem>>, vector<32x128xbf16>
    %cst_8 = arith.constant dense<0.000000e+00> : vector<16x128xf32>
    %11 = tpu.matmul %9, %10, %cst_8 {dimension_numbers = #tpu.dot_dimension_numbers<[1], [0], [0], [1], [0, 0, 1, 1], [], []>} : vector<16x32xbf16>, vector<32x128xbf16>, vector<16x128xf32> -> vector<16x128xf32>
    %c0_9 = arith.constant 0 : index
    %c0_10 = arith.constant 0 : index
    %12 = vector.load %arg5[%c0_9, %c0_10] : memref<1x128xf32, #tpu.memory_space<vmem>>, vector<1x128xf32>
    %13 = vector.broadcast %12 : vector<1x128xf32> to vector<16x128xf32>
    %14 = arith.addf %11, %13 : vector<16x128xf32>
    %c0_11 = arith.constant 0 : index
    %c0_12 = arith.constant 0 : index
    %15 = vector.load %arg6[%c0_11, %c0_12] : memref<16x128xbf16, #tpu.memory_space<vmem>>, vector<16x128xbf16>
    %cst_13 = arith.constant 0.000000e+00 : bf16
    %16 = vector.broadcast %cst_13 : bf16 to vector<16x128xbf16>
    %17 = arith.cmpf ogt, %15, %16 : vector<16x128xbf16>
    %cst_14 = arith.constant -1.000000e+30 : f32
    %18 = vector.broadcast %cst_14 : f32 to vector<16x128xf32>
    %19 = arith.select %17, %14, %18 : vector<16x128xi1>, vector<16x128xf32>
    %cst_15 = arith.constant dense<0xFF800000> : vector<16xf32>
    %20 = vector.multi_reduction <maximumf>, %19, %cst_15 [1] : vector<16x128xf32> to vector<16xf32>
    %21 = vector.shape_cast %20 : vector<16xf32> to vector<16x1xf32>
    %22 = vector.broadcast %21 : vector<16x1xf32> to vector<16x128xf32>
    %23 = arith.subf %19, %22 : vector<16x128xf32>
    %24 = math.exp %23 : vector<16x128xf32>
    %cst_16 = arith.constant 0.000000e+00 : f32
    %25 = vector.broadcast %cst_16 : f32 to vector<16x128xf32>
    %26 = arith.select %17, %24, %25 : vector<16x128xi1>, vector<16x128xf32>
    %cst_17 = arith.constant dense<0.000000e+00> : vector<16xf32>
    %27 = vector.multi_reduction <add>, %26, %cst_17 [1] : vector<16x128xf32> to vector<16xf32>
    %28 = vector.shape_cast %27 : vector<16xf32> to vector<16x1xf32>
    %cst_18 = arith.constant 1.000000e-30 : f32
    %29 = vector.broadcast %cst_18 : f32 to vector<16x1xf32>
    %30 = arith.maximumf %28, %29 : vector<16x1xf32>
    %31 = vector.broadcast %30 : vector<16x1xf32> to vector<16x128xf32>
    %32 = arith.divf %26, %31 : vector<16x128xf32>
    %33 = math.tanh %14 : vector<16x128xf32>
    %34 = tpu.iota {dimensions = array<i32: 1>} : vector<16x128xi32>
    %c16_i32 = arith.constant 16 : i32
    %35 = vector.broadcast %c16_i32 : i32 to vector<16x128xi32>
    %36 = arith.cmpi eq, %34, %35 : vector<16x128xi32>
    %37 = arith.select %36, %33, %32 : vector<16x128xi1>, vector<16x128xf32>
    %c0_19 = arith.constant 0 : index
    %c0_20 = arith.constant 0 : index
    %38 = vector.load %arg7[%c0_19, %c0_20] : memref<16x128xf32, #tpu.memory_space<vmem>>, vector<16x128xf32>
    tpu.vector_store %arg7[%c0_19, %c0_20], %37 {strides = array<i32>} : memref<16x128xf32, #tpu.memory_space<vmem>>, vector<16x128xf32>,
    return
  }
  func.func @transform_0(%arg0: i32) -> (i32, i32) {
    %c0_i32 = arith.constant 0 : i32
    %c0_i32_0 = arith.constant 0 : i32
    return %arg0, %c0_i32 : i32, i32
  }
  func.func @transform_1(%arg0: i32) -> (i32, i32) {
    %c0_i32 = arith.constant 0 : i32
    %c0_i32_0 = arith.constant 0 : i32
    %c0_i32_1 = arith.constant 0 : i32
    return %c0_i32, %c0_i32_0 : i32, i32
  }
  func.func @transform_2(%arg0: i32) -> (i32, i32) {
    %c0_i32 = arith.constant 0 : i32
    %c0_i32_0 = arith.constant 0 : i32
    %c0_i32_1 = arith.constant 0 : i32
    return %c0_i32, %c0_i32_0 : i32, i32
  }
  func.func @transform_3(%arg0: i32) -> (i32, i32) {
    %c0_i32 = arith.constant 0 : i32
    %c0_i32_0 = arith.constant 0 : i32
    %c0_i32_1 = arith.constant 0 : i32
    return %c0_i32, %c0_i32_0 : i32, i32
  }
  func.func @transform_4(%arg0: i32) -> (i32, i32) {
    %c0_i32 = arith.constant 0 : i32
    %c0_i32_0 = arith.constant 0 : i32
    %c0_i32_1 = arith.constant 0 : i32
    return %c0_i32, %c0_i32_0 : i32, i32
  }
  func.func @transform_5(%arg0: i32) -> (i32, i32) {
    %c0_i32 = arith.constant 0 : i32
    %c0_i32_0 = arith.constant 0 : i32
    return %arg0, %c0_i32 : i32, i32
  }
  func.func @transform_6(%arg0: i32) -> (i32, i32) {
    %c0_i32 = arith.constant 0 : i32
    %c0_i32_0 = arith.constant 0 : i32
    return %arg0, %c0_i32 : i32, i32
  }
}

</mosaic_0001>

<bundles_post_ra>
// kernel: tpu_custom_call.1
= control target key start
LH: loop header
LB: loop body
LE: loop exit
PB: predicated region body
PF: predicated region fallthrough
CT: control target
= control target key end

     0   :  { %v328_v1 = vmov 0.0   ;;  %vm329_vm0 = vmmov 0   ;;  %s424_s0 = inlined_call_operand.vmem [shape: f32[16,64], index: 0, kind: input, shape index: {}]   ;;  %s425_s1 = inlined_call_operand.vmem [shape: bf16[64,32], index: 1, kind: input, shape index: {}]   ;;  %s426_s2 = inlined_call_operand.vmem [shape: f32[1,32], index: 2, kind: input, shape index: {}]   ;;  %s427_s3 = inlined_call_operand.vmem [shape: bf16[32,128], index: 3, kind: input, shape index: {}]   ;;  %s428_s4 = inlined_call_operand.vmem [shape: f32[1,128], index: 4, kind: input, shape index: {}]   ;;  %s429_s5 = inlined_call_operand.vmem [shape: bf16[16,128], index: 5, kind: input, shape index: {}]   ;;  %s430_s6 = inlined_call_operand.hbm [shape: f32[16,128], index: 6, kind: output, shape index: {}]  }
   0x1   :  { %v288_v0 = vld [vmem:[%s425_s1 + $0x18] sm:$0xff]   ;;  %262 = vmatprep.subr.bf16.mxu0 %v328_v1  ;;  %274 = vmatprep.subr.bf16.mxu1 %v328_v1  ;;  %v289_v2 = vld [vmem:[%s425_s1 + $0x10] sm:$0xff]   ;;  %v290_v3 = vld [vmem:[%s425_s1 + $0x8] sm:$0xff]  }
   0x2   :  { %263 = vmatpush3.bf16.msra.mxu0 %v288_v0  ;;  %270 = vmatprep.mubr.msk.bf16.mxu0 %vm329_vm0, %v328_v1 }
   0x3   :  { %264 = vmatprep.subr.bf16.mxu0 %v328_v1  ;;  %278 = vmatprep.mubr.msk.bf16.mxu1 %vm329_vm0, %v328_v1 }
   0x6   :  { %265 = vmatpush3.bf16.msra.mxu0 %v289_v2 }
   0x7   :  { %11 = vsyncpa [#allocation3], 0  ;;  %266 = vmatprep.subr.bf16.mxu0 %v328_v1  ;;  %v291_v4 = vld [vmem:[%s425_s1] sm:$0xff]   ;;  %v28_v6 = vld [vmem:[%s424_s0 + $0x8] sm:$0xff]  ;;  %vm69_vm1 = vcmask 523264   ;;  %vm140_vm2 = vcmask 261120   ;;  %v221_v52 = vlaneseq }
   0x8   :  { %v27_v5 = vld [vmem:[%s424_s0] sm:$0xff]  ;;  %v292_v8 = vld [vmem:[%s427_s3 + $0x8] sm:$0xff]   ;;  %v330_v22 = vmov 0  }
   0x9   :  { %v29_v7 = vpack.c.bf16 %v28_v6, %v27_v5  ;;  %275 = vmatpush3.bf16.msra.mxu1 %v292_v8  ;;  %v293_v9 = vld [vmem:[%s427_s3] sm:$0xff]   ;;  %v222_v53 = vand.u32 127, %v221_v52 }
   0xa   :  { %267 = vmatpush3.bf16.msra.mxu0 %v290_v3  ;;  %276 = vmatprep.subr.bf16.mxu1 %v328_v1  ;;  %v244_v10 = vld [vmem:[%s426_s2] ss:$0 sm:$0xff]  ;;  %v186_v21 = vld [vmem:[%s429_s5 + $0x4] sm:$0xf] }
   0xb   :  { %268 = vmatprep.subr.bf16.mxu0 %v328_v1  ;;  %v185_v20 = vld [vmem:[%s429_s5] sm:$0xf]  ;;  %vm188_vm4 = vcmp.gt.bf16.partialorder %v186_v21, 0  ;;  %vm223_vm7 = vcmp.eq.s32.totalorder %v222_v53, 16 }
   0xc   :  { %vm187_vm3 = vcmp.gt.bf16.partialorder %v185_v20, 0  ;;  %v190_v25 = vsel %vm188_vm4, 65537, %v330_v22  ;;  %v250_v26 = vld [vmem:[%s428_s4] ss:$0 sm:$0xff]  ;;  %s331_s4 = smov [#allocation2]  }
   0xd   :  { %277 = vmatpush3.bf16.msra.mxu1 %v293_v9  ;;  %v189_v23 = vsel %vm187_vm3, 65537, %v330_v22  ;;  %v192_v29 = vunpack.c.l.b16 %v190_v25  ;;  %s233_s5 = sshll.u32 %s331_s4, 4  ;;  %s234_s5 = int_to_ptr.vmem [resolvable:$true] %s233_s5 }
   0xe   :  { %269 = vmatpush3.bf16.msra.mxu0 %v291_v4  ;;  %v191_v24 = vunpack.c.l.b16 %v189_v23  ;;  %s306_s17 = scalar_lea.vmem %s234_s5, 256  ;;  %p311_p1 = scmp.lt.s32.totalorder %s234_s5, %s234_s5 }
   0xf   :  { %vm411_vm6 = vcmp.ne.s32.totalorder %v192_v29, 0  ;;  %p307_p0 = scmp.ne.s32.totalorder %s234_s5, %s306_s17  ;;  %p312_p2 = scmp.lt.s32.totalorder %s306_s17, %s306_s17 }
  0x10   :  { %vm405_vm5 = vcmp.ne.s32.totalorder %v191_v24, 0 }
  0x11   :  { %271 = vmatmul.mubr.msk.bf16.vlgmr.msra.gmra.mxu0 %vm69_vm1, %v29_v7  ;;  %p313_p3 = por %p312_p2, %p311_p1 }
  0x13   :  { %p314_p4 = pnand %p313_p3, %p307_p0 }
  0xd1   :  { %v107_v11 = vpop.f32.mrf.mxu0 }
  0xd2   :  { %v108_v13 = vadd.f32 %v244_v10, %v107_v11 }
  0xd3   :  { %v272_v12 = vpop.f32.mrf.mxu0 }
  0xd4   :  { %v114_v17 = vmax.f32 %v108_v13, 0.0 }
  0xd5   :  { %v110_v14 = vpop.f32.mrf.mxu0 }
  0xd6   :  { %v111_v15 = vadd.f32 %v244_v10, %v110_v14 }
  0xd7   :  { %v273_v16 = vpop.f32.mrf.mxu0 }
  0xd8   :  { %v115_v18 = vmax.f32 %v111_v15, 0.0 }
  0xda   :  { %v116_v19 = vpack.c.bf16 %v115_v18, %v114_v17 }
  0xdc   :  { %279 = vmatmul.mubr.msk.bf16.vlgmr.msra.gmra.mxu1 %vm140_vm2, %v116_v19 }
 0x19c   :  { %v178_v27 = vpop.f32.mrf.mxu1 }
 0x19d   :  { %v179_v30 = vadd.f32 %v250_v26, %v178_v27 }
 0x19e   :  { %v280_v31 = vpop.f32.mrf.mxu1 }
 0x19f   :  { %v195_v32 = vsel %vm405_vm5, %v179_v30, -1e+30 }
 0x1a0   :  { %197 = vmax.xlane.f32.xlu0 %v195_v32  ;;  %v181_v33 = vpop.f32.mrf.mxu1 }
 0x1a1   :  { %v182_v35 = vadd.f32 %v250_v26, %v181_v33 }
 0x1a2   :  { %v281_v36 = vpop.f32.mrf.mxu1 }
 0x1a3   :  { %v196_v37 = vsel %vm411_vm6, %v182_v35, -1e+30 }
 0x1a4   :  { %199 = vmax.xlane.f32.xlu0 %v196_v37 }
 0x229   :  { %v198_v38 = vpop.xlane.xlu0 %197 }
 0x22a   :  { %v201_v39 = vsub.f32 %v195_v32, %v198_v38 }
 0x22c   :  { %v203_v40 = vmul.f32 1.442695, %v201_v39 }
 0x22d   :  { %v200_v41 = vpop.xlane.xlu0 %199 }
 0x22e   :  { %294 = vpow2.f32 %v203_v40  ;;  %v202_v42 = vsub.f32 %v196_v37, %v200_v41 }
 0x230   :  { %v205_v43 = vmul.f32 1.442695, %v202_v42 }
 0x232   :  { %296 = vpow2.f32 %v205_v43 }
 0x23b   :  { %v295_v44 = vpop.eup %294 }
 0x23c   :  { %v207_v45 = vsel %vm405_vm5, %v295_v44, 0.0 }
 0x23d   :  { %209 = vadd.xlane.f32.xlu1 %v207_v45 }
 0x23f   :  { %v297_v46 = vpop.eup %296 }
 0x240   :  { %v208_v47 = vsel %vm411_vm6, %v297_v46, 0.0 }
 0x241   :  { %211 = vadd.xlane.f32.xlu1 %v208_v47 }
 0x2c6   :  { %v210_v48 = vpop.xlane.xlu1 %209 }
 0x2c7   :  { %v213_v49 = vmax.f32 %v210_v48, 1e-30 }
 0x2c9   :  { %298 = vrcp.f32 %v213_v49 }
 0x2ca   :  { %v212_v50 = vpop.xlane.xlu1 %211  ;;  %300 = vtanh.f32 %v179_v30 }
 0x2cb   :  { %v214_v51 = vmax.f32 %v212_v50, 1e-30 }
 0x2cd   :  { %302 = vrcp.f32 %v214_v51 }
 0x2ce   :  { %304 = vtanh.f32 %v182_v35 }
 0x2d6   :  { %v299_v54 = vpop.eup %298 }
 0x2d7   :  { %v216_v55 = vmul.f32 %v299_v54, %v207_v45  ;;  %v301_v56 = vpop.eup %300 }
 0x2d9   :  { %v224_v57 = vsel %vm223_vm7, %v301_v56, %v216_v55 }
 0x2da   :  { %v303_v58 = vpop.eup %302  ;;  %226 = vst [vmem:[#allocation2] sm:$0xff] %v224_v57 }
 0x2db   :  { %v218_v59 = vmul.f32 %v303_v58, %v208_v47  ;;  %v305_v60 = vpop.eup %304 }
 0x2dd   :  { %v225_v61 = vsel %vm223_vm7, %v305_v60, %v218_v59 }
 0x2de   :  { %227 = vst [vmem:[#allocation2 + $0x8] sm:$0xff] %v225_v61 }
 0x2df   :  { %317 = shalt.err (!%p314_p4)
}
 0x2e0   :  { %s332_s18 = smov 128   ;;  %s333_s19 = smov 8  }
 0x2e1   :  { %239 = dma.vmem_to_hbm [thread:$0]  %s234_s5, 256, %s430_s6, [#allocation3], %s332_s18, %s332_s18, %s333_s19  }
 0x2e2   :  { %326 = dma.done.wait [#allocation3], 256  }
 0x2e3   :  { %327 = vsyncadd [#allocation3], 4294967040 }
 0x2e4   :  { %243 = vsyncpa [#allocation3], 1 }

</bundles_post_ra>
